<compile_context>
chip_gen: v7x
topology: tpu7x:2x2x1
jax: 0.10.0
libtpu: 0.0.40
codegen_flags: <defaults>
</compile_context>

<pallas_src>
import functools

import jax
import jax.numpy as jnp
from jax import lax
from jax.experimental import pallas as pl
from jax.experimental.pallas import tpu as pltpu


def _conv_bias_relu_kernel(x_ref, halo_ref, w_ref, b_ref, o_ref, xwin_ref, *,
                           apply_relu, compute_dtype):
    # x_ref    : (1, tile_h, W, KC)   body rows; KC = kW*Cin (kw taps packed)
    # halo_ref : (1, 2, W, KC)        [row above tile, row below tile]
    # w_ref    : (kH, KC, Cout)
    # b_ref    : (1, Cout)            float32
    # o_ref    : (1, tile_h, W, Cout)
    # xwin_ref : VMEM scratch (tile_h + 2, W, KC)
    tile_h = x_ref.shape[1]
    W = x_ref.shape[2]
    KC = x_ref.shape[3]
    kH = w_ref.shape[0]
    Cout = w_ref.shape[2]
    S = tile_h * W

    # Assemble the haloed row window (rows -1 .. tile_h of this tile) in VMEM.
    xwin_ref[0] = halo_ref[0, 0]
    xwin_ref[1:1 + tile_h] = x_ref[0]
    xwin_ref[1 + tile_h] = halo_ref[0, 1]

    # Bias-initialized f32 accumulator (no separate bias pass at the end).
    acc = jnp.broadcast_to(b_ref[...], (S, Cout)).astype(jnp.float32)

    # kH dots with K = kW*Cin; the kh shift is a leading-dim row slice of the
    # haloed window, so no strided sublane window -> no per-tap relayout.
    for kh in range(kH):
        patch = xwin_ref[kh:kh + tile_h].reshape(S, KC)
        wk = w_ref[kh]
        if compute_dtype is not None:
            patch = patch.astype(compute_dtype)
            wk = wk.astype(compute_dtype)
        acc = acc + jnp.dot(patch, wk, preferred_element_type=jnp.float32)

    if apply_relu:
        acc = jnp.maximum(acc, 0.0)
    o_ref[0] = acc.reshape(tile_h, W, Cout).astype(o_ref.dtype)


def _pick_tile_h(H, W, KC, Cout, itemsize, vmem_budget_bytes):
    """Largest divisor of H whose double-buffered blocks fit the VMEM budget."""
    divisors = [d for d in range(1, H + 1) if H % d == 0]
    best = 1
    for d in divisors:
        per_step = 2 * d * W * (KC + Cout) * itemsize   # double-buffered in+out
        per_step += (d + 2) * W * KC * itemsize         # xwin scratch
        if per_step <= vmem_budget_bytes:
            best = d
    # Keep at least two row tiles when H is big enough so the pipeline has
    # steps to overlap and both v7x TensorCores get work even at batch 1-2.
    if best == H and H >= 16:
        best = max(d for d in divisors if d < H)
    return best


def conv_bias_relu_pallas(x_nchw, w_hwio, bias, *, apply_relu=True,
                          use_bf16_operands=False, tile_h=None,
                          vmem_budget_bytes=8 * 1024 * 1024):
    """3x3, stride-1, SAME conv + bias (+ ReLU). NCHW in -> NCHW out."""
    N, Cin, H, W = x_nchw.shape
    kH, kW, _, Cout = w_hwio.shape
    assert (kH, kW) == (3, 3), "kernel specialized to the module default k=3"
    # TODO(synk): stride>1, even kernel sizes and the bn=True branch are not
    # implemented (module defaults: kernel_size=3, stride=1, bn=False).
    dtype = x_nchw.dtype
    KC = kW * Cin

    x_nhwc = jnp.transpose(x_nchw, (0, 2, 3, 1))

    # Pack the kw taps into channels: xk[n,i,j, kw*Cin+cin] = x[n,i, j+kw-1, cin].
    zcol = jnp.zeros((N, H, 1, Cin), dtype)
    left = jnp.concatenate([zcol, x_nhwc[:, :, :W - 1, :]], axis=2)
    right = jnp.concatenate([x_nhwc[:, :, 1:, :], zcol], axis=2)
    xk = jnp.concatenate([left, x_nhwc, right], axis=3)          # (N, H, W, KC)

    if tile_h is None:
        tile_h = _pick_tile_h(H, W, KC, Cout, jnp.dtype(dtype).itemsize,
                              vmem_budget_bytes)
    assert H % tile_h == 0
    nH = H // tile_h

    # Per-tile halo rows (zeros at the image border -> SAME padding without
    # ever writing a padded copy of the activation to HBM).
    zrow = jnp.zeros((N, 1, W, KC), dtype)
    top = jnp.concatenate([zrow, xk[:, tile_h - 1:H - 1:tile_h]], axis=1)
    bot = jnp.concatenate([xk[:, tile_h:H:tile_h], zrow], axis=1)
    halo = jnp.stack([top, bot], axis=2).reshape(N, 2 * nH, W, KC)

    w_k = w_hwio.reshape(kH, KC, Cout).astype(dtype)
    b2 = bias.reshape(1, Cout).astype(jnp.float32)

    kernel = functools.partial(
        _conv_bias_relu_kernel,
        apply_relu=apply_relu,
        compute_dtype=jnp.bfloat16 if use_bf16_operands else None)

    out_nhwc = pl.pallas_call(
        kernel,
        out_shape=jax.ShapeDtypeStruct((N, H, W, Cout), dtype),
        grid_spec=pltpu.PrefetchScalarGridSpec(
            num_scalar_prefetch=0,
            grid=(N, nH),
            in_specs=[
                pl.BlockSpec((1, tile_h, W, KC), lambda n, h: (n, h, 0, 0)),
                pl.BlockSpec((1, 2, W, KC), lambda n, h: (n, h, 0, 0)),
                pl.BlockSpec((kH, KC, Cout), lambda n, h: (0, 0, 0)),
                pl.BlockSpec((1, Cout), lambda n, h: (0, 0)),
            ],
            out_specs=pl.BlockSpec((1, tile_h, W, Cout),
                                   lambda n, h: (n, h, 0, 0)),
            scratch_shapes=[pltpu.VMEM((tile_h + 2, W, KC), dtype)],
        ),
        compiler_params=pltpu.CompilerParams(
            dimension_semantics=("parallel", "parallel")),
    )(xk, halo, w_k, b2)

    return jnp.transpose(out_nhwc, (0, 3, 1, 2))


class ConvPallas:
    """Mirror of im2scene Conv(inp_dim, out_dim, kernel_size=3, stride=1,
    bn=False, relu=True) forward pass, NCHW in / NCHW out."""

    def __init__(self, inp_dim, out_dim, kernel_size=3, stride=1, relu=True,
                 key=None):
        assert kernel_size == 3 and stride == 1
        self.inp_dim = inp_dim
        self.out_dim = out_dim
        self.relu = relu
        if key is None:
            key = jax.random.PRNGKey(0)
        kw_key, kb_key = jax.random.split(key)
        fan_in = inp_dim * kernel_size * kernel_size
        bound = 1.0 / (fan_in ** 0.5)          # PyTorch default uniform bound
        self.w_hwio = jax.random.uniform(
            kw_key, (kernel_size, kernel_size, inp_dim, out_dim),
            minval=-bound, maxval=bound, dtype=jnp.float32)
        self.bias = jax.random.uniform(
            kb_key, (out_dim,), minval=-bound, maxval=bound, dtype=jnp.float32)

    def __call__(self, x_nchw):
        assert x_nchw.shape[1] == self.inp_dim, \
            "{} {}".format(x_nchw.shape[1], self.inp_dim)
        return conv_bias_relu_pallas(
            x_nchw, self.w_hwio, self.bias, apply_relu=self.relu)


def _reference(x_nchw, w_hwio, bias, apply_relu=True):
    # Pure-JAX reference (XLA conv) for the correctness check.
    x_nhwc = jnp.transpose(x_nchw, (0, 2, 3, 1))
    y = lax.conv_general_dilated(
        x_nhwc, w_hwio, window_strides=(1, 1), padding="SAME",
        dimension_numbers=("NHWC", "HWIO", "NHWC"))
    y = y + bias[None, None, None, :]
    if apply_relu:
        y = jnp.maximum(y, 0.0)
    return jnp.transpose(y, (0, 3, 1, 2))


if __name__ == "__main__":
    key = jax.random.PRNGKey(0)
    xk_key, pk_key = jax.random.split(key)

    N, Cin, H, W = 2, 4, 16, 16
    Cout = 8
    x = jax.random.normal(xk_key, (N, Cin, H, W), dtype=jnp.float32)

    conv = ConvPallas(Cin, Cout, kernel_size=3, stride=1, key=pk_key)
    y = conv(x)
    y = jax.block_until_ready(y)

    y_ref = _reference(x, conv.w_hwio, conv.bias)
    assert y.shape == (N, Cout, H, W)
    assert jnp.allclose(y, y_ref, atol=2e-5, rtol=2e-5), "mismatch vs reference"

    print("KERNEL_OK")
</pallas_src>

<mosaic_0001>
module attributes {stable_mosaic.version = 11 : i64} {
  func.func @_conv_bias_relu_kernel(%arg0: i32, %arg1: i32, %arg2: memref<1x8x16x12xf32, #tpu.memory_space<vmem>>, %arg3: memref<1x2x16x12xf32, #tpu.memory_space<vmem>>, %arg4: memref<3x12x8xf32, #tpu.memory_space<vmem>>, %arg5: memref<1x8xf32, #tpu.memory_space<vmem>>, %arg6: memref<1x8x16x8xf32, #tpu.memory_space<vmem>>, %arg7: memref<10x16x12xf32, #tpu.memory_space<vmem>>) attributes {dimension_semantics = [#tpu.dimension_semantics<parallel>, #tpu.dimension_semantics<parallel>], iteration_bounds = array<i64: 2, 2>, scalar_prefetch = 0 : i64, scratch_operands = 1 : i64, tpu.core_type = #tpu.core_type<tc>, window_params = [{transform_indices = @transform_0, window_bounds = array<i64: 1, 8, 16, 12>}, {transform_indices = @transform_1, window_bounds = array<i64: 1, 2, 16, 12>}, {pipeline_mode = #tpu.pipeline_mode<synchronous>, transform_indices = @transform_2, window_bounds = array<i64: 3, 12, 8>}, {pipeline_mode = #tpu.pipeline_mode<synchronous>, transform_indices = @transform_3, window_bounds = array<i64: 1, 8>}, {transform_indices = @transform_4, window_bounds = array<i64: 1, 8, 16, 8>}]} {
    %c0 = arith.constant 0 : index
    %c0_0 = arith.constant 0 : index
    %c0_1 = arith.constant 0 : index
    %c0_2 = arith.constant 0 : index
    %0 = vector.load %arg3[%c0, %c0_0, %c0_1, %c0_2] : memref<1x2x16x12xf32, #tpu.memory_space<vmem>>, vector<1x1x16x12xf32>
    %1 = vector.shape_cast %0 : vector<1x1x16x12xf32> to vector<16x12xf32>
    %c0_3 = arith.constant 0 : index
    %c0_4 = arith.constant 0 : index
    %c0_5 = arith.constant 0 : index
    %2 = vector.load %arg7[%c0_3, %c0_4, %c0_5] : memref<10x16x12xf32, #tpu.memory_space<vmem>>, vector<1x16x12xf32>
    %3 = vector.shape_cast %2 : vector<1x16x12xf32> to vector<16x12xf32>
    %4 = vector.shape_cast %1 : vector<16x12xf32> to vector<1x16x12xf32>
    tpu.vector_store %arg7[%c0_3, %c0_4, %c0_5], %4 {strides = array<i32>} : memref<10x16x12xf32, #tpu.memory_space<vmem>>, vector<1x16x12xf32>,
    %c0_6 = arith.constant 0 : index
    %c0_7 = arith.constant 0 : index
    %c0_8 = arith.constant 0 : index
    %c0_9 = arith.constant 0 : index
    %5 = vector.load %arg2[%c0_6, %c0_7, %c0_8, %c0_9] : memref<1x8x16x12xf32, #tpu.memory_space<vmem>>, vector<1x8x16x12xf32>
    %6 = vector.shape_cast %5 : vector<1x8x16x12xf32> to vector<8x16x12xf32>
    %c1 = arith.constant 1 : index
    %c0_10 = arith.constant 0 : index
    %c0_11 = arith.constant 0 : index
    %7 = vector.load %arg7[%c1, %c0_10, %c0_11] : memref<10x16x12xf32, #tpu.memory_space<vmem>>, vector<8x16x12xf32>
    tpu.vector_store %arg7[%c1, %c0_10, %c0_11], %6 {strides = array<i32>} : memref<10x16x12xf32, #tpu.memory_space<vmem>>, vector<8x16x12xf32>,
    %c0_12 = arith.constant 0 : index
    %c1_13 = arith.constant 1 : index
    %c0_14 = arith.constant 0 : index
    %c0_15 = arith.constant 0 : index
    %8 = vector.load %arg3[%c0_12, %c1_13, %c0_14, %c0_15] : memref<1x2x16x12xf32, #tpu.memory_space<vmem>>, vector<1x1x16x12xf32>
    %9 = vector.shape_cast %8 : vector<1x1x16x12xf32> to vector<16x12xf32>
    %c9 = arith.constant 9 : index
    %c0_16 = arith.constant 0 : index
    %c0_17 = arith.constant 0 : index
    %10 = vector.load %arg7[%c9, %c0_16, %c0_17] : memref<10x16x12xf32, #tpu.memory_space<vmem>>, vector<1x16x12xf32>
    %11 = vector.shape_cast %10 : vector<1x16x12xf32> to vector<16x12xf32>
    %12 = vector.shape_cast %9 : vector<16x12xf32> to vector<1x16x12xf32>
    tpu.vector_store %arg7[%c9, %c0_16, %c0_17], %12 {strides = array<i32>} : memref<10x16x12xf32, #tpu.memory_space<vmem>>, vector<1x16x12xf32>,
    %c0_18 = arith.constant 0 : index
    %c0_19 = arith.constant 0 : index
    %13 = vector.load %arg5[%c0_18, %c0_19] : memref<1x8xf32, #tpu.memory_space<vmem>>, vector<1x8xf32>
    %14 = vector.shape_cast %13 : vector<1x8xf32> to vector<1x8xf32>
    %15 = vector.broadcast %14 : vector<1x8xf32> to vector<128x8xf32>
    %c0_20 = arith.constant 0 : index
    %c0_21 = arith.constant 0 : index
    %c0_22 = arith.constant 0 : index
    %16 = vector.load %arg7[%c0_20, %c0_21, %c0_22] : memref<10x16x12xf32, #tpu.memory_space<vmem>>, vector<8x16x12xf32>
    %17 = vector.shape_cast %16 : vector<8x16x12xf32> to vector<128x12xf32>
    %c0_23 = arith.constant 0 : index
    %c0_24 = arith.constant 0 : index
    %c0_25 = arith.constant 0 : index
    %18 = vector.load %arg4[%c0_23, %c0_24, %c0_25] : memref<3x12x8xf32, #tpu.memory_space<vmem>>, vector<1x12x8xf32>
    %19 = vector.shape_cast %18 : vector<1x12x8xf32> to vector<12x8xf32>
    %cst = arith.constant dense<0.000000e+00> : vector<128x8xf32>
    %20 = tpu.matmul %17, %19, %cst {dimension_numbers = #tpu.dot_dimension_numbers<[1], [0], [0], [1], [0, 0, 1, 1], [], []>} : vector<128x12xf32>, vector<12x8xf32>, vector<128x8xf32> -> vector<128x8xf32>
    %21 = arith.addf %15, %20 : vector<128x8xf32>
    %c1_26 = arith.constant 1 : index
    %c0_27 = arith.constant 0 : index
    %c0_28 = arith.constant 0 : index
    %22 = vector.load %arg7[%c1_26, %c0_27, %c0_28] : memref<10x16x12xf32, #tpu.memory_space<vmem>>, vector<8x16x12xf32>
    %23 = vector.shape_cast %22 : vector<8x16x12xf32> to vector<128x12xf32>
    %c1_29 = arith.constant 1 : index
    %c0_30 = arith.constant 0 : index
    %c0_31 = arith.constant 0 : index
    %24 = vector.load %arg4[%c1_29, %c0_30, %c0_31] : memref<3x12x8xf32, #tpu.memory_space<vmem>>, vector<1x12x8xf32>
    %25 = vector.shape_cast %24 : vector<1x12x8xf32> to vector<12x8xf32>
    %cst_32 = arith.constant dense<0.000000e+00> : vector<128x8xf32>
    %26 = tpu.matmul %23, %25, %cst_32 {dimension_numbers = #tpu.dot_dimension_numbers<[1], [0], [0], [1], [0, 0, 1, 1], [], []>} : vector<128x12xf32>, vector<12x8xf32>, vector<128x8xf32> -> vector<128x8xf32>
    %27 = arith.addf %21, %26 : vector<128x8xf32>
    %c2 = arith.constant 2 : index
    %c0_33 = arith.constant 0 : index
    %c0_34 = arith.constant 0 : index
    %28 = vector.load %arg7[%c2, %c0_33, %c0_34] : memref<10x16x12xf32, #tpu.memory_space<vmem>>, vector<8x16x12xf32>
    %29 = vector.shape_cast %28 : vector<8x16x12xf32> to vector<128x12xf32>
    %c2_35 = arith.constant 2 : index
    %c0_36 = arith.constant 0 : index
    %c0_37 = arith.constant 0 : index
    %30 = vector.load %arg4[%c2_35, %c0_36, %c0_37] : memref<3x12x8xf32, #tpu.memory_space<vmem>>, vector<1x12x8xf32>
    %31 = vector.shape_cast %30 : vector<1x12x8xf32> to vector<12x8xf32>
    %cst_38 = arith.constant dense<0.000000e+00> : vector<128x8xf32>
    %32 = tpu.matmul %29, %31, %cst_38 {dimension_numbers = #tpu.dot_dimension_numbers<[1], [0], [0], [1], [0, 0, 1, 1], [], []>} : vector<128x12xf32>, vector<12x8xf32>, vector<128x8xf32> -> vector<128x8xf32>
    %33 = arith.addf %27, %32 : vector<128x8xf32>
    %cst_39 = arith.constant 0.000000e+00 : f32
    %34 = vector.broadcast %cst_39 : f32 to vector<128x8xf32>
    %35 = arith.maximumf %33, %34 : vector<128x8xf32>
    %36 = vector.shape_cast %35 : vector<128x8xf32> to vector<8x16x8xf32>
    %c0_40 = arith.constant 0 : index
    %c0_41 = arith.constant 0 : index
    %c0_42 = arith.constant 0 : index
    %c0_43 = arith.constant 0 : index
    %37 = vector.load %arg6[%c0_40, %c0_41, %c0_42, %c0_43] : memref<1x8x16x8xf32, #tpu.memory_space<vmem>>, vector<1x8x16x8xf32>
    %38 = vector.shape_cast %37 : vector<1x8x16x8xf32> to vector<8x16x8xf32>
    %39 = vector.shape_cast %36 : vector<8x16x8xf32> to vector<1x8x16x8xf32>
    tpu.vector_store %arg6[%c0_40, %c0_41, %c0_42, %c0_43], %39 {strides = array<i32>} : memref<1x8x16x8xf32, #tpu.memory_space<vmem>>, vector<1x8x16x8xf32>,
    return
  }
  func.func @transform_0(%arg0: i32, %arg1: i32) -> (i32, i32, i32, i32) {
    %c0_i32 = arith.constant 0 : i32
    %c0_i32_0 = arith.constant 0 : i32
    %c0_i32_1 = arith.constant 0 : i32
    return %arg0, %arg1, %c0_i32, %c0_i32_0 : i32, i32, i32, i32
  }
  func.func @transform_1(%arg0: i32, %arg1: i32) -> (i32, i32, i32, i32) {
    %c0_i32 = arith.constant 0 : i32
    %c0_i32_0 = arith.constant 0 : i32
    %c0_i32_1 = arith.constant 0 : i32
    return %arg0, %arg1, %c0_i32, %c0_i32_0 : i32, i32, i32, i32
  }
  func.func @transform_2(%arg0: i32, %arg1: i32) -> (i32, i32, i32) {
    %c0_i32 = arith.constant 0 : i32
    %c0_i32_0 = arith.constant 0 : i32
    %c0_i32_1 = arith.constant 0 : i32
    %c0_i32_2 = arith.constant 0 : i32
    return %c0_i32, %c0_i32_0, %c0_i32_1 : i32, i32, i32
  }
  func.func @transform_3(%arg0: i32, %arg1: i32) -> (i32, i32) {
    %c0_i32 = arith.constant 0 : i32
    %c0_i32_0 = arith.constant 0 : i32
    %c0_i32_1 = arith.constant 0 : i32
    return %c0_i32, %c0_i32_0 : i32, i32
  }
  func.func @transform_4(%arg0: i32, %arg1: i32) -> (i32, i32, i32, i32) {
    %c0_i32 = arith.constant 0 : i32
    %c0_i32_0 = arith.constant 0 : i32
    %c0_i32_1 = arith.constant 0 : i32
    return %arg0, %arg1, %c0_i32, %c0_i32_0 : i32, i32, i32, i32
  }
}

</mosaic_0001>

<bundles_post_ra>
// kernel: tpu_custom_call.1
= control target key start
LH: loop header
LB: loop body
LE: loop exit
PB: predicated region body
PF: predicated region fallthrough
CT: control target
= control target key end

     0   :  { %s1569_s15 = smov 0   ;;  %s1571_s16 = smov 0   ;;  %s1831_s0 = inlined_call_operand.vmem [shape: f32[2,16,16,12], index: 0, kind: input, shape index: {}]   ;;  %s1832_s1 = inlined_call_operand.vmem [shape: f32[2,4,16,12], index: 1, kind: input, shape index: {}]   ;;  %s1833_s2 = inlined_call_operand.vmem [shape: f32[3,12,8], index: 2, kind: input, shape index: {}]   ;;  %s1834_s3 = inlined_call_operand.vmem [shape: f32[1,8], index: 3, kind: input, shape index: {}]   ;;  %s1835_s4 = inlined_call_operand.vmem [shape: f32[2,16,16,8], index: 4, kind: output, shape index: {}]  }
   0x1   :  { %s1573_s17 = smov 0   ;;  %s1575_s18 = smov 0  }
   0x2   :  { %s1577_s19 = smov 0  }
   0x3 LB: > { %s23_s20 = sadd.s32 1, %s1533_s17  ;;  %s26_s21 = sadd.s32 1, %s1537_s18  ;;  %s1541_s19 = sphi %s1577_s19, %s14_s19   ;;  %s1537_s18 = sphi %s1575_s18, %s1841_s18   ;;  %s1533_s17 = sphi %s1573_s17, %s1840_s17   ;;  %s1529_s16 = sphi %s1571_s16, %s1839_s16   ;;  %s1525_s15 = sphi %s1569_s15, %s1838_s15  }
   0x4   : > { %p24_p0 = scmp.ge.s32.totalorder %s23_s20, 2  ;;  %p1183_p1 = scmp.ge.s32.totalorder %s1541_s19, 1 }
   0x5   : > { %p202_p2 = scmp.lt.s32.totalorder %s1541_s19, 5 }
   0x6   : > { %s1843_s20 = smov (%p24_p0, %s23_s20), 0  ;;  %s1845_s21 = smov (!%p24_p0, %s26_s21), %s1537_s18 }
   0x7   : > { %p203_p3 = pnand %p1183_p1, %p202_p2  ;;  %p28_p4 = scmp.ge.s32.totalorder %s1845_s21, 2 }
   0x8   : > { %v348_v0 = vld [vmem:[%s1833_s2] sm:$0xff] (!%p203_p3)  ;;  %v349_v1 = vld [vmem:[%s1833_s2 + $0x8] sm:$0xf] (!%p203_p3)  ;;  %vm398_vm0 = vcmask (!%p203_p3), 1043456   ;;  %v1216_v2 = vld [vmem:[%s1833_s2 + $0x10] sm:$0xff] (!%p203_p3)  ;;  %vm1543_vm1 = vmmov (!%p203_p3), 1  }
   0x9   : > { %s1847_s21 = smov (%p28_p4, %s1845_s21), 0  ;;  %206 = sbr.rel (%p203_p3) target bundleno = 303 (0x12f), region = 36 }
   0xa   : > { %v1394_v3 = vpack.c.bf16 (!%p203_p3), %v349_v1, %v348_v0  ;;  %vm1612_vm2 = vmpackc.low (!%p203_p3), %vm398_vm0, %vm1543_vm1  ;;  %v1217_v5 = vld [vmem:[%s1833_s2 + $0x18] sm:$0xf] (!%p203_p3)  ;;  %s1184_s30 = sshll.u32 (!%p203_p3), %s1525_s15, 3  ;;  %p249_p5 = scmp.lt.s32.totalorder (!%p203_p3), %s1529_s16, 1  ;;  %v1235_v6 = vld [vmem:[%s1833_s2 + $0x20] sm:$0xff] (!%p203_p3)  ;;  %vm283_vm3 = vcmask (!%p203_p3), 97280  }
   0xb   : > { %v1624_v7 = vpack.c.bf16 (!%p203_p3), %v1217_v5, %v1216_v2  ;;  %p251_p6 = scmp.lt.s32.totalorder (!%p203_p3), %s1184_s30, 15  ;;  %s1188_s7 = sshll.u32 (!%p203_p3), %s1525_s15, 1  ;;  %v1236_v8 = vld [vmem:[%s1833_s2 + $0x28] sm:$0xf] (!%p203_p3)  ;;  %v1759_v54 = vld [vmem:[%s1834_s3] ss:$0 sm:$0xff] (!%p203_p3) }
   0xc   : > { %1396 = vmatprep.subr.msk.bf16.mxu1 (!%p203_p3), %vm1612_vm2, %v1394_v3  ;;  %v1635_v9 = vpack.c.bf16 (!%p203_p3), %v1236_v8, %v1235_v6  ;;  %p262_p7 = scmp.lt.s32.totalorder (!%p203_p3), %s1188_s7, 3  ;;  %vm1042_vm4 = vcmask (!%p203_p3), 64512  }
   0xd   : > { %1399 = vmatpush3.bf16.msk.msra.mxu1 (!%p203_p3), %vm1612_vm2, %v1394_v3  ;;  %1402 = vmatprep.subr.msk.bf16.mxu0 (!%p203_p3), %vm1612_vm2, %v1624_v7 }
   0xe   : > { %1405 = vmatpush3.bf16.msk.msra.mxu0 (!%p203_p3), %vm1612_vm2, %v1624_v7  ;;  %1412 = vmatprep.subr.msk.bf16.mxu1 (!%p203_p3), %vm1612_vm2, %v1624_v7 }
   0xf   : > { %1408 = vmatprep.subr.msk.bf16.mxu0 (!%p203_p3), %vm1612_vm2, %v1635_v9 }
  0x10   : > { %s1849_s16 = smov (!%p249_p5, %s1529_s16), 1  ;;  %s1851_s30 = smov (!%p251_p6, %s1184_s30), 15 }
  0x11   : > { %s1186_s10 = sshll.u32 %s1849_s16, 5  ;;  %s1185_s11 = sshll.u32 %s1851_s30, 1 }
  0x12   : > { %s1652_s12 = sadd.s32 %s1186_s10, %s1185_s11  ;;  %s1190_s23 = sshll.u32 %s1849_s16, 3 }
  0x13   : > { %s1187_s13 = sshll.u32 %s1652_s12, 3  ;;  %s1853_s7 = smov (!%p262_p7, %s1188_s7), 3 }
  0x14   : > { %s1660_s22 = scalar_lea.vmem %s1831_s0, %s1187_s13  ;;  %s1189_s24 = sshll.u32 %s1853_s7, 1 }
  0x15   : > { %v286_v10 = vld [vmem:[%s1660_s22] sm:$0xff]  ;;  %v287_v11 = vld [vmem:[%s1660_s22 + $0x8] sm:$0xff]  ;;  %v288_v12 = vld [vmem:[%s1660_s22 + $0x10] sm:$0xff]  ;;  %s266_s16 = sadd.s32 %s1190_s23, %s1189_s24  ;;  %s1768_s7 = scalar_lea.vmem %s1835_s4, %s1187_s13 }
  0x16   : > { %303 = vst.msk [vmem:[#allocation2 + $0x10] sm:$0xff] %vm283_vm3, %v286_v10  ;;  %304 = vst.msk [vmem:[#allocation2 + $0x18] sm:$0xff] %vm283_vm3, %v287_v11  ;;  %v289_v13 = vld [vmem:[%s1660_s22 + $0x18] sm:$0xff]  ;;  %v290_v14 = vld [vmem:[%s1660_s22 + $0x20] sm:$0xff]  ;;  %s1191_s25 = sshll.u32 %s266_s16, 3 }
  0x17   : > { %305 = vst.msk [vmem:[#allocation2 + $0x20] sm:$0xff] %vm283_vm3, %v288_v12  ;;  %v291_v15 = vld [vmem:[%s1660_s22 + $0x28] sm:$0xff]  ;;  %306 = vst.msk [vmem:[#allocation2 + $0x28] sm:$0xff] %vm283_vm3, %v289_v13  ;;  %v292_v16 = vld [vmem:[%s1660_s22 + $0x30] sm:$0xff]  ;;  %s268_s28 = scalar_lea.vmem %s1832_s1, %s1191_s25 }
  0x18   : > { %307 = vst.msk [vmem:[#allocation2 + $0x30] sm:$0xff] %vm283_vm3, %v290_v14  ;;  %308 = vst.msk [vmem:[#allocation2 + $0x38] sm:$0xff] %vm283_vm3, %v291_v15  ;;  %v293_v17 = vld [vmem:[%s1660_s22 + $0x38] sm:$0xff]  ;;  %v294_v18 = vld [vmem:[%s1660_s22 + $0x40] sm:$0xff] }
  0x19   : > { %309 = vst.msk [vmem:[#allocation2 + $0x40] sm:$0xff] %vm283_vm3, %v292_v16  ;;  %310 = vst.msk [vmem:[#allocation2 + $0x48] sm:$0xff] %vm283_vm3, %v293_v17  ;;  %v295_v19 = vld [vmem:[%s1660_s22 + $0x48] sm:$0xff]  ;;  %v296_v20 = vld [vmem:[%s1660_s22 + $0x50] sm:$0xff] }
  0x1a   : > { %311 = vst.msk [vmem:[#allocation2 + $0x50] sm:$0xff] %vm283_vm3, %v294_v18  ;;  %v297_v21 = vld [vmem:[%s1660_s22 + $0x58] sm:$0xff]  ;;  %312 = vst.msk [vmem:[#allocation2 + $0x58] sm:$0xff] %vm283_vm3, %v295_v19  ;;  %v298_v22 = vld [vmem:[%s1660_s22 + $0x60] sm:$0xff] }
  0x1b   : > { %313 = vst.msk [vmem:[#allocation2 + $0x60] sm:$0xff] %vm283_vm3, %v296_v20  ;;  %314 = vst.msk [vmem:[#allocation2 + $0x68] sm:$0xff] %vm283_vm3, %v297_v21  ;;  %v299_v23 = vld [vmem:[%s1660_s22 + $0x68] sm:$0xff]  ;;  %v300_v24 = vld [vmem:[%s1660_s22 + $0x70] sm:$0xff] }
  0x1c   : > { %315 = vst.msk [vmem:[#allocation2 + $0x70] sm:$0xff] %vm283_vm3, %v298_v22  ;;  %316 = vst.msk [vmem:[#allocation2 + $0x78] sm:$0xff] %vm283_vm3, %v299_v23  ;;  %v301_v25 = vld [vmem:[%s1660_s22 + $0x78] sm:$0xff]  ;;  %v281_v26 = vld [vmem:[%s268_s28] sm:$0xff] }
  0x1d   : > { %317 = vst.msk [vmem:[#allocation2 + $0x80] sm:$0xff] %vm283_vm3, %v300_v24  ;;  %v282_v27 = vld [vmem:[%s268_s28 + $0x8] sm:$0xff]  ;;  %318 = vst.msk [vmem:[#allocation2 + $0x88] sm:$0xff] %vm283_vm3, %v301_v25  ;;  %v1196_v28 = vld [vmem:[%s268_s28 + $0x10] sm:$0xff] }
  0x1e   : > { %284 = vst.msk [vmem:[#allocation2] sm:$0xff] %vm283_vm3, %v281_v26  ;;  %285 = vst.msk [vmem:[#allocation2 + $0x8] sm:$0xff] %vm283_vm3, %v282_v27  ;;  %v1197_v29 = vld [vmem:[%s268_s28 + $0x18] sm:$0xff]  ;;  %v563_v30 = vld [vmem:[#allocation2 + $0x10] sm:$0xff] }
  0x1f   : > { %323 = vst.msk [vmem:[#allocation2 + $0x90] sm:$0xff] %vm283_vm3, %v1196_v28  ;;  %v564_v31 = vld [vmem:[#allocation2 + $0x18] sm:$0xff]  ;;  %v565_v32 = vld [vmem:[#allocation2 + $0x20] sm:$0xff]  ;;  %324 = vst.msk [vmem:[#allocation2 + $0x98] sm:$0xff] %vm283_vm3, %v1197_v29  ;;  %1342 = vmatprep.mubr.msk.f32.mxu0 %vm283_vm3, %v563_v30 }
  0x20   : > { %1343 = vmatmul.mubr.msk.f32.vlgmr.msra.gmra.mrb[0].mxu0 %vm283_vm3, %v564_v31  ;;  %v566_v33 = vld [vmem:[#allocation2 + $0x28] sm:$0xff]  ;;  %v567_v34 = vld [vmem:[#allocation2 + $0x30] sm:$0xff]  ;;  %v568_v37 = vld [vmem:[#allocation2 + $0x38] sm:$0xff] }
  0x21   : > { %1411 = vmatpush3.bf16.msk.msra.mxu0 %vm1612_vm2, %v1635_v9  ;;  %1345 = vmatprep.mubr.msk.f32.mxu0 %vm283_vm3, %v565_v32  ;;  %v569_v38 = vld [vmem:[#allocation2 + $0x40] sm:$0xff]  ;;  %v570_v39 = vld [vmem:[#allocation2 + $0x48] sm:$0xff]  ;;  %v342_v40 = vld [vmem:[#allocation2 + $0x50] sm:$0xff] }
  0x22   : > { %v343_v41 = vld [vmem:[#allocation2 + $0x58] sm:$0xff]  ;;  %v344_v42 = vld [vmem:[#allocation2 + $0x60] sm:$0xff]  ;;  %v345_v43 = vld [vmem:[#allocation2 + $0x68] sm:$0xff] }
  0x23   : > { %v346_v44 = vld [vmem:[#allocation2 + $0x70] sm:$0xff]  ;;  %v347_v45 = vld [vmem:[#allocation2 + $0x78] sm:$0xff] }
  0x24   : > { %1346 = vmatmul.mubr.msk.f32.gmra.mrb[2].mxu0 %vm283_vm3, %v566_v33  ;;  %v807_v46 = vld [vmem:[#allocation2 + $0x80] sm:$0xff]  ;;  %v808_v47 = vld [vmem:[#allocation2 + $0x88] sm:$0xff] }
  0x25   : > { %v332_v35 = vld [vmem:[#allocation2] sm:$0xff]  ;;  %v333_v36 = vld [vmem:[#allocation2 + $0x8] sm:$0xff]  ;;  %1348 = vmatprep.mubr.msk.f32.mxu0 %vm283_vm3, %v567_v34 }
  0x26   : > { %1314 = vmatprep.mubr.msk.f32.mxu1 %vm283_vm3, %v332_v35  ;;  %v809_v48 = vld [vmem:[#allocation2 + $0x90] sm:$0xff]  ;;  %v810_v49 = vld [vmem:[#allocation2 + $0x98] sm:$0xff] }
  0x27   : > { %1315 = vmatmul.mubr.msk.f32.vlgmr.msra.gmra.mrb[0].mxu1 %vm283_vm3, %v333_v36 }
  0x28   : > { %1413 = vmatpush3.bf16.msk.msra.mxu1 %vm1612_vm2, %v1624_v7  ;;  %1317 = vmatprep.mubr.msk.f32.mxu1 %vm283_vm3, %v563_v30 }
  0x29   : > { %1349 = vmatmul.mubr.msk.f32.gmra.mrb[4].mxu0 %vm283_vm3, %v568_v37 }
  0x2a   : > { %1351 = vmatprep.mubr.msk.f32.mxu0 %vm283_vm3, %v569_v38 }
  0x2b   : > { %1318 = vmatmul.mubr.msk.f32.gmra.mrb[2].mxu1 %vm283_vm3, %v564_v31 }
  0x2c   : > { %1320 = vmatprep.mubr.msk.f32.mxu1 %vm283_vm3, %v565_v32 }
  0x2d   : > { %1352 = vmatmul.mubr.msk.f32.gmra.mrb[6].mxu0 %vm283_vm3, %v570_v39 }
  0x2e   : > { %1370 = vmatprep.mubr.msk.f32.mxu0 %vm283_vm3, %v565_v32 }
  0x2f   : > { %1321 = vmatmul.mubr.msk.f32.gmra.mrb[4].mxu1 %vm283_vm3, %v566_v33 }
  0x30   : > { %1323 = vmatprep.mubr.msk.f32.mxu1 %vm283_vm3, %v567_v34 }
  0x31   : > { %1371 = vmatmul.mubr.msk.f32.vlgmr.msra.gmra.mrb[0].mxu0 %vm283_vm3, %v566_v33 }
  0x32   : > { %1373 = vmatprep.mubr.msk.f32.mxu0 %vm283_vm3, %v567_v34 }
  0x33   : > { %1324 = vmatmul.mubr.msk.f32.gmra.mrb[6].mxu1 %vm283_vm3, %v568_v37 }
  0x34   : > { %1326 = vmatprep.mubr.msk.f32.mxu1 %vm283_vm3, %v569_v38 }
  0x35   : > { %1374 = vmatmul.mubr.msk.f32.gmra.mrb[2].mxu0 %vm283_vm3, %v568_v37 }
  0x36   : > { %1376 = vmatprep.mubr.msk.f32.mxu0 %vm283_vm3, %v569_v38 }
  0x37   : > { %1327 = vmatmul.mubr.msk.f32.gmra.mrb[8].mxu1 %vm283_vm3, %v570_v39 }
  0x38   : > { %1329 = vmatprep.mubr.msk.f32.mxu1 %vm283_vm3, %v342_v40 }
  0x39   : > { %1377 = vmatmul.mubr.msk.f32.gmra.mrb[4].mxu0 %vm283_vm3, %v570_v39 }
  0x3a   : > { %1379 = vmatprep.mubr.msk.f32.mxu0 %vm283_vm3, %v342_v40 }
  0x3b   : > { %1330 = vmatmul.mubr.msk.f32.gmra.mrb[10].mxu1 %vm283_vm3, %v343_v41 }
  0x3c   : > { %1332 = vmatprep.mubr.msk.f32.mxu1 %vm283_vm3, %v344_v42 }
  0x3d   : > { %1380 = vmatmul.mubr.msk.f32.gmra.mrb[6].mxu0 %vm283_vm3, %v343_v41 }
  0x3e   : > { %1382 = vmatprep.mubr.msk.f32.mxu0 %vm283_vm3, %v344_v42 }
  0x3f   : > { %1333 = vmatmul.mubr.msk.f32.gmra.mrb[12].mxu1 %vm283_vm3, %v345_v43 }
  0x40   : > { %1335 = vmatprep.mubr.msk.f32.mxu1 %vm283_vm3, %v346_v44 }
  0x41   : > { %1383 = vmatmul.mubr.msk.f32.gmra.mrb[8].mxu0 %vm283_vm3, %v345_v43 }
  0x42   : > { %1385 = vmatprep.mubr.msk.f32.mxu0 %vm283_vm3, %v346_v44 }
  0x43   : > { %1336 = vmatmul.mubr.msk.f32.gmra.mrb[14].mxu1 %vm283_vm3, %v347_v45 }
  0x44   : > { %1354 = vmatprep.mubr.msk.f32.mxu1 %vm283_vm3, %v342_v40 }
  0x45   : > { %1386 = vmatmul.mubr.msk.f32.gmra.mrb[10].mxu0 %vm283_vm3, %v347_v45 }
  0x46   : > { %1388 = vmatprep.mubr.msk.f32.mxu0 %vm283_vm3, %v807_v46 }
  0x47   : > { %1355 = vmatmul.mubr.msk.f32.vlgmr.msra.gmra.mrb[8].mxu1 %vm283_vm3, %v343_v41 }
  0x48   : > { %1357 = vmatprep.mubr.msk.f32.mxu1 %vm283_vm3, %v344_v42 }
  0x49   : > { %1389 = vmatmul.mubr.msk.f32.gmra.mrb[12].mxu0 %vm283_vm3, %v808_v47 }
  0x4a   : > { %1391 = vmatprep.mubr.msk.f32.mxu0 %vm283_vm3, %v809_v48 }
  0x4b   : > { %1358 = vmatmul.mubr.msk.f32.gmra.mrb[10].mxu1 %vm283_vm3, %v345_v43 }
  0x4c   : > { %1360 = vmatprep.mubr.msk.f32.mxu1 %vm283_vm3, %v346_v44 }
  0x4d   : > { %1392 = vmatmul.mubr.msk.f32.gmra.mrb[14].mxu0 %vm283_vm3, %v810_v49 }
  0x4f   : > { %1361 = vmatmul.mubr.msk.f32.gmra.mrb[12].mxu1 %vm283_vm3, %v347_v45 }
  0x50   : > { %1363 = vmatprep.mubr.msk.f32.mxu1 %vm283_vm3, %v807_v46 }
  0x53   : > { %1364 = vmatmul.mubr.msk.f32.gmra.mrb[14].mxu1 %vm283_vm3, %v808_v47 }
  0xfa   : > { %v1316_v50 = vpop.f32.mrb[0].mxu1 }
  0xfb   : > { %v468_v51 = vpop.f32.mrb[1].mxu1  ;;  %v548_v56 = vadd.f32 %v1316_v50, %v1759_v54 }
  0xfc   : > { %v547_v58 = vadd.f32 %v1759_v54, %v468_v51 }
  0xfe   : > { %v1319_v52 = vpop.f32.mrb[2].mxu1 }
  0xff   : > { %v478_v53 = vpop.f32.mrb[3].mxu1  ;;  %v550_v0 = vadd.f32 %v1319_v52, %v1759_v54 }
 0x100   : > { %v549_v3 = vadd.f32 %v1759_v54, %v478_v53 }
 0x102   : > { %v1322_v55 = vpop.f32.mrb[4].mxu1 }
 0x103   : > { %v488_v57 = vpop.f32.mrb[5].mxu1  ;;  %v552_v9 = vadd.f32 %v1322_v55, %v1759_v54 }
 0x104   : > { %v1372_v59 = vpop.f32.mrb[0].mxu0  ;;  %v551_v11 = vadd.f32 %v1759_v54, %v488_v57 }
 0x105   : > { %v1415_v60 = vadd.f32 %v1372_v59, %v548_v56  ;;  %v931_v61 = vpop.f32.mrb[1].mxu0 }
 0x106   : > { %v1325_v62 = vpop.f32.mrb[6].mxu1  ;;  %v1417_v63 = vadd.f32 %v931_v61, %v547_v58 }
 0x107   : > { %v498_v1 = vpop.f32.mrb[7].mxu1  ;;  %v1027_v2 = vmax.f32 %v1415_v60, 0.0  ;;  %v554_v17 = vadd.f32 %v1325_v62, %v1759_v54 }
 0x108   : > { %v1026_v4 = vmax.f32 %v1417_v63, 0.0  ;;  %v1375_v5 = vpop.f32.mrb[2].mxu0  ;;  %v553_v19 = vadd.f32 %v1759_v54, %v498_v1 }
 0x109   : > { %1044 = vst.msk [vmem:[%s1768_s7 + $0x8] sm:$0xff] %vm1042_vm4, %v1027_v2  ;;  %v1419_v6 = vadd.f32 %v1375_v5, %v550_v0  ;;  %v941_v7 = vpop.f32.mrb[3].mxu0 }
 0x10a   : > { %1043 = vst.msk [vmem:[%s1768_s7] sm:$0xff] %vm1042_vm4, %v1026_v4  ;;  %v1421_v8 = vadd.f32 %v941_v7, %v549_v3 }
 0x10b   : > { %v1029_v10 = vmax.f32 %v1419_v6, 0.0 }
 0x10c   : > { %v1028_v12 = vmax.f32 %v1421_v8, 0.0  ;;  %v1378_v13 = vpop.f32.mrb[4].mxu0 }
 0x10d   : > { %1046 = vst.msk [vmem:[%s1768_s7 + $0x18] sm:$0xff] %vm1042_vm4, %v1029_v10  ;;  %v1423_v14 = vadd.f32 %v1378_v13, %v552_v9  ;;  %v951_v15 = vpop.f32.mrb[5].mxu0 }
 0x10e   : > { %1045 = vst.msk [vmem:[%s1768_s7 + $0x10] sm:$0xff] %vm1042_vm4, %v1028_v12  ;;  %v1425_v16 = vadd.f32 %v951_v15, %v551_v11 }
 0x10f   : > { %v1031_v18 = vmax.f32 %v1423_v14, 0.0 }
 0x110   : > { %v1030_v20 = vmax.f32 %v1425_v16, 0.0  ;;  %v1381_v21 = vpop.f32.mrb[6].mxu0 }
 0x111   : > { %1048 = vst.msk [vmem:[%s1768_s7 + $0x28] sm:$0xff] %vm1042_vm4, %v1031_v18  ;;  %v1427_v22 = vadd.f32 %v1381_v21, %v554_v17  ;;  %v961_v23 = vpop.f32.mrb[7].mxu0 }
 0x112   : > { %1047 = vst.msk [vmem:[%s1768_s7 + $0x20] sm:$0xff] %vm1042_vm4, %v1030_v20  ;;  %v1429_v24 = vadd.f32 %v961_v23, %v553_v19 }
 0x113   : > { %v1033_v25 = vmax.f32 %v1427_v22, 0.0 }
 0x114   : > { %v1032_v26 = vmax.f32 %v1429_v24, 0.0  ;;  %v1384_v27 = vpop.f32.mrb[8].mxu0 }
 0x115   : > { %1050 = vst.msk [vmem:[%s1768_s7 + $0x38] sm:$0xff] %vm1042_vm4, %v1033_v25  ;;  %v971_v28 = vpop.f32.mrb[9].mxu0 }
 0x116   : > { %1049 = vst.msk [vmem:[%s1768_s7 + $0x30] sm:$0xff] %vm1042_vm4, %v1032_v26 }
 0x118   : > { %v1387_v29 = vpop.f32.mrb[10].mxu0 }
 0x119   : > { %v981_v30 = vpop.f32.mrb[11].mxu0 }
 0x11a   : > { %v1356_v31 = vpop.f32.mrb[8].mxu1 }
 0x11b   : > { %v1430_v32 = vadd.f32 %v1356_v31, %v1759_v54  ;;  %v739_v33 = vpop.f32.mrb[9].mxu1 }
 0x11c   : > { %v1432_v34 = vadd.f32 %v1759_v54, %v739_v33  ;;  %v1390_v35 = vpop.f32.mrb[12].mxu0 }
 0x11d   : > { %v1431_v36 = vadd.f32 %v1430_v32, %v1384_v27  ;;  %v991_v37 = vpop.f32.mrb[13].mxu0 }
 0x11e   : > { %v1433_v38 = vadd.f32 %v1432_v34, %v971_v28  ;;  %v1359_v39 = vpop.f32.mrb[10].mxu1 }
 0x11f   : > { %v1035_v40 = vmax.f32 %v1431_v36, 0.0  ;;  %v1434_v41 = vadd.f32 %v1359_v39, %v1759_v54  ;;  %v749_v42 = vpop.f32.mrb[11].mxu1 }
 0x120   : > { %v1034_v43 = vmax.f32 %v1433_v38, 0.0  ;;  %v1436_v44 = vadd.f32 %v1759_v54, %v749_v42  ;;  %v1393_v45 = vpop.f32.mrb[14].mxu0 }
 0x121   : > { %1052 = vst.msk [vmem:[%s1768_s7 + $0x48] sm:$0xff] %vm1042_vm4, %v1035_v40  ;;  %v1435_v46 = vadd.f32 %v1434_v41, %v1387_v29  ;;  %v1001_v47 = vpop.f32.mrb[15].mxu0 }
 0x122   : > { %1051 = vst.msk [vmem:[%s1768_s7 + $0x40] sm:$0xff] %vm1042_vm4, %v1034_v43  ;;  %v1437_v48 = vadd.f32 %v1436_v44, %v981_v30  ;;  %v1362_v49 = vpop.f32.mrb[12].mxu1 }
 0x123   : > { %v1037_v50 = vmax.f32 %v1435_v46, 0.0  ;;  %v1438_v51 = vadd.f32 %v1362_v49, %v1759_v54  ;;  %v759_v52 = vpop.f32.mrb[13].mxu1 }
 0x124   : > { %v1036_v53 = vmax.f32 %v1437_v48, 0.0  ;;  %v1440_v55 = vadd.f32 %v1759_v54, %v759_v52 }
 0x125   : > { %1054 = vst.msk [vmem:[%s1768_s7 + $0x58] sm:$0xff] %vm1042_vm4, %v1037_v50  ;;  %v1439_v56 = vadd.f32 %v1438_v51, %v1390_v35 }
 0x126   : > { %1053 = vst.msk [vmem:[%s1768_s7 + $0x50] sm:$0xff] %vm1042_vm4, %v1036_v53  ;;  %v1441_v57 = vadd.f32 %v1440_v55, %v991_v37  ;;  %v1365_v58 = vpop.f32.mrb[14].mxu1 }
 0x127   : > { %v1039_v59 = vmax.f32 %v1439_v56, 0.0  ;;  %v1442_v60 = vadd.f32 %v1365_v58, %v1759_v54  ;;  %v769_v61 = vpop.f32.mrb[15].mxu1 }
 0x128   : > { %v1038_v62 = vmax.f32 %v1441_v57, 0.0  ;;  %v1444_v63 = vadd.f32 %v1759_v54, %v769_v61 }
 0x129   : > { %1056 = vst.msk [vmem:[%s1768_s7 + $0x68] sm:$0xff] %vm1042_vm4, %v1039_v59  ;;  %v1443_v0 = vadd.f32 %v1442_v60, %v1393_v45 }
 0x12a   : > { %1055 = vst.msk [vmem:[%s1768_s7 + $0x60] sm:$0xff] %vm1042_vm4, %v1038_v62  ;;  %v1445_v1 = vadd.f32 %v1444_v63, %v1001_v47 }
 0x12b   : > { %v1041_v2 = vmax.f32 %v1443_v0, 0.0 }
 0x12c   : > { %v1040_v3 = vmax.f32 %v1445_v1, 0.0 }
 0x12d   : > { %1058 = vst.msk [vmem:[%s1768_s7 + $0x78] sm:$0xff] %vm1042_vm4, %v1041_v2 }
 0x12e   : > { %1057 = vst.msk [vmem:[%s1768_s7 + $0x70] sm:$0xff] %vm1042_vm4, %v1040_v3 }
 0x12f PF: > { %s14_s19 = sadd.s32 1, %s1541_s19   ;;  %s1838_s15 = smov %s1533_s17 }
 0x130   : > { %p11_p8 = scmp.ge.s32.totalorder %s14_s19, 6   ;;  %s1839_s16 = smov %s1537_s18 }
 0x131   : > { %s1840_s17 = smov %s1843_s20  ;;  %s1841_s18 = smov %s1847_s21 }
 0x132   :  { %13 = sbr.rel (!%p11_p8) target bundleno = 3 (0x3), region = 75 }

</bundles_post_ra>
